<compile_context>
chip_gen: v7x
topology: tpu7x:2x2x1
jax: 0.10.0
libtpu: 0.0.40
codegen_flags: <defaults>
</compile_context>

<pallas_src>
import functools

import jax
import jax.numpy as jnp
from jax.experimental import pallas as pl
from jax.experimental.pallas import tpu as pltpu


def _gvi_kernel(n_rows, block_rows, logits_ref, y_ref, out_ref):
    i = pl.program_id(0)

    logits = logits_ref[...].astype(jnp.float32)            # (TN, C)
    y = y_ref[...]                                          # (TN, 1) int32

    # Numerically-stable log-sum-exp along the class axis (lanes).
    m = jnp.max(logits, axis=-1, keepdims=True)             # (TN, 1)
    lse = jnp.log(jnp.sum(jnp.exp(logits - m), axis=-1, keepdims=True))

    # One-hot gather of the label column from the UN-shifted logits (no dynamic
    # gather on TPU): log p(y_i) = logits[i, y_i] - m_i - lse_i.  The extra
    # per-row subtract is on a (TN, 1) column and is effectively free.
    cols = jax.lax.broadcasted_iota(jnp.int32, logits.shape, 1)     # (TN, C)
    picked = jnp.sum(jnp.where(cols == y, logits, 0.0), axis=-1, keepdims=True)
    log_py = picked - m - lse                                       # (TN, 1)

    # Zero padded tail rows of the last block (also kills any NaN from pad data).
    rows = i * block_rows + jax.lax.broadcasted_iota(jnp.int32, log_py.shape, 0)
    out_ref[...] = jnp.where(rows < n_rows, log_py, 0.0)


def gaussian_variational_inference(logits, y, kl, beta, *, block_rows=None):
    """loss = CrossEntropy(logits, y) + beta * kl, via a batch-tiled Pallas kernel.

    NOTE: out-of-range / negative labels are undefined here (they yield
    picked = 0 so log p(y) = -m - lse), whereas torch.nn.CrossEntropyLoss would
    raise; there is no ignore_index support.
    """
    n, c = logits.shape
    if n == 0:
        raise ValueError("gaussian_variational_inference: empty batch (N == 0).")

    itemsize = jnp.dtype(logits.dtype).itemsize
    # Sublane alignment: 8 rows for 32-bit inputs, 16 for 16-bit (bf16) inputs.
    row_align = 8 if itemsize >= 4 else 16

    # Generation-aware VMEM budget (v7x: 64 MiB/TC; v5e/v6e: 128 MiB).
    try:
        vmem_cap = int(pltpu.get_tpu_info().vmem_capacity_bytes)
    except Exception:
        vmem_cap = 64 << 20                                # conservative (v7x) fallback
    vmem_limit = min(64 << 20, (vmem_cap * 5) // 8)        # 40 MiB on v7x, 64 MiB on v5e/v6e
    buffer_budget = vmem_limit - (8 << 20)                 # headroom for compiler scratch

    # Per-row VMEM cost, double-buffered: logits tile + 128-lane-padded (TN,1)
    # int32 label tile (512 B/row) + 128-lane-padded (TN,1) f32 output tile.
    per_row_bytes = 2 * (c * itemsize + 2 * 128 * 4)
    if per_row_bytes * row_align > buffer_budget:
        # TODO(synk): huge-vocab case needs a 2-D grid over C with online softmax.
        raise ValueError(
            f"Class dim C={c} is too large for a single-row-block softmax within "
            f"{buffer_budget >> 20} MiB of VMEM on this TPU generation.")

    # ~8 MiB of logits per buffer amortizes the fixed per-grid-step overhead; cap
    # so the double-buffered working set (incl. padded label/output blocks) fits.
    target_logits_bytes = 8 << 20
    tn = min(target_logits_bytes // (c * itemsize), buffer_budget // per_row_bytes)
    if block_rows is not None:
        tn = min(tn, block_rows)
    tn = max(row_align, (tn // row_align) * row_align)
    tn = min(tn, ((n + row_align - 1) // row_align) * row_align)
    grid = pl.cdiv(n, tn)

    y2d = y.astype(jnp.int32).reshape(n, 1)
    kernel = functools.partial(_gvi_kernel, n, tn)

    log_py = pl.pallas_call(
        kernel,
        out_shape=jax.ShapeDtypeStruct((grid * tn, 1), jnp.float32),
        grid_spec=pltpu.PrefetchScalarGridSpec(
            num_scalar_prefetch=0,
            grid=(grid,),
            in_specs=[
                pl.BlockSpec((tn, c), lambda i: (i, 0)),   # logits row tile (lanes = classes)
                pl.BlockSpec((tn, 1), lambda i: (i, 0)),   # labels row tile
            ],
            out_specs=pl.BlockSpec((tn, 1), lambda i: (i, 0)),  # per-row log p(y) partials
        ),
        compiler_params=pltpu.CompilerParams(
            dimension_semantics=("parallel",),   # disjoint output blocks, no carried state
            vmem_limit_bytes=vmem_limit,
        ),
        cost_estimate=pl.CostEstimate(
            flops=5 * n * c,
            transcendentals=n * c + n,
            bytes_accessed=n * c * itemsize + n * 4 + grid * tn * 4,
        ),
    )(logits, y2d)

    # Finalize on the host-side graph: CE = -mean(log p(y_i)); loss = CE + beta*kl.
    ce = -(jnp.sum(log_py) / jnp.float32(n))
    return ce + jnp.asarray(beta, jnp.float32) * jnp.asarray(kl, jnp.float32)


if __name__ == "__main__":
    key = jax.random.PRNGKey(0)
    k1, k2, k3 = jax.random.split(key, 3)

    # Small shapes; N is deliberately not a multiple of the 8-row tile so the
    # multi-step grid + tail-row masking + parallel-partials path is exercised.
    N, C = 20, 128
    logits = jax.random.normal(k1, (N, C), dtype=jnp.float32)
    y = jax.random.randint(k2, (N,), 0, C, dtype=jnp.int32)
    kl = jnp.abs(jax.random.normal(k3, (), dtype=jnp.float32)) * 10.0
    beta = jnp.float32(1.0 / 256.0)

    # Pure-JAX reference of the same formula.
    log_sm = jax.nn.log_softmax(logits, axis=-1)
    ref = -jnp.mean(log_sm[jnp.arange(N), y]) + beta * kl

    # Multi-block path (20 = 8 + 8 + 4).
    loss_multi = gaussian_variational_inference(logits, y, kl, beta, block_rows=8)
    jax.block_until_ready(loss_multi)
    assert jnp.allclose(loss_multi, ref, rtol=1e-5, atol=1e-5), (loss_multi, ref)

    # Default auto-sized (single-block) path.
    loss_auto = gaussian_variational_inference(logits, y, kl, beta)
    jax.block_until_ready(loss_auto)
    assert jnp.allclose(loss_auto, ref, rtol=1e-5, atol=1e-5), (loss_auto, ref)

    print("KERNEL_OK")
</pallas_src>

<mosaic_0001>
module attributes {stable_mosaic.version = 11 : i64} {
  func.func @_gvi_kernel(%arg0: i32, %arg1: memref<8x128xf32, #tpu.memory_space<vmem>>, %arg2: memref<8x1xi32, #tpu.memory_space<vmem>>, %arg3: memref<8x1xf32, #tpu.memory_space<vmem>>) attributes {dimension_semantics = [#tpu.dimension_semantics<parallel>], iteration_bounds = array<i64: 3>, scalar_prefetch = 0 : i64, scratch_operands = 0 : i64, tpu.core_type = #tpu.core_type<tc>, window_params = [{transform_indices = @transform_0, window_bounds = array<i64: 8, 128>}, {transform_indices = @transform_1, window_bounds = array<i64: 8, 1>}, {transform_indices = @transform_2, window_bounds = array<i64: 8, 1>}]} {
    %c0 = arith.constant 0 : index
    %c0_0 = arith.constant 0 : index
    %0 = vector.load %arg1[%c0, %c0_0] : memref<8x128xf32, #tpu.memory_space<vmem>>, vector<8x128xf32>
    %c0_1 = arith.constant 0 : index
    %c0_2 = arith.constant 0 : index
    %1 = vector.load %arg2[%c0_1, %c0_2] : memref<8x1xi32, #tpu.memory_space<vmem>>, vector<8x1xi32>
    %cst = arith.constant dense<0xFF800000> : vector<8xf32>
    %2 = vector.multi_reduction <maximumf>, %0, %cst [1] : vector<8x128xf32> to vector<8xf32>
    %3 = vector.shape_cast %2 : vector<8xf32> to vector<8x1xf32>
    %4 = vector.broadcast %3 : vector<8x1xf32> to vector<8x128xf32>
    %5 = arith.subf %0, %4 : vector<8x128xf32>
    %6 = math.exp %5 : vector<8x128xf32>
    %cst_3 = arith.constant dense<0.000000e+00> : vector<8xf32>
    %7 = vector.multi_reduction <add>, %6, %cst_3 [1] : vector<8x128xf32> to vector<8xf32>
    %8 = vector.shape_cast %7 : vector<8xf32> to vector<8x1xf32>
    %9 = math.log %8 : vector<8x1xf32>
    %10 = tpu.iota {dimensions = array<i32: 1>} : vector<8x128xi32>
    %11 = vector.broadcast %1 : vector<8x1xi32> to vector<8x128xi32>
    %12 = arith.cmpi eq, %10, %11 : vector<8x128xi32>
    %cst_4 = arith.constant 0.000000e+00 : f32
    %13 = vector.broadcast %cst_4 : f32 to vector<8x128xf32>
    %14 = arith.select %12, %0, %13 : vector<8x128xi1>, vector<8x128xf32>
    %cst_5 = arith.constant dense<0.000000e+00> : vector<8xf32>
    %15 = vector.multi_reduction <add>, %14, %cst_5 [1] : vector<8x128xf32> to vector<8xf32>
    %16 = vector.shape_cast %15 : vector<8xf32> to vector<8x1xf32>
    %17 = arith.subf %16, %3 : vector<8x1xf32>
    %18 = arith.subf %17, %9 : vector<8x1xf32>
    %c8_i32 = arith.constant 8 : i32
    %19 = arith.muli %arg0, %c8_i32 : i32
    %20 = tpu.iota {dimensions = array<i32: 0>} : vector<8x1xi32>
    %21 = vector.broadcast %19 : i32 to vector<8x1xi32>
    %22 = arith.addi %21, %20 : vector<8x1xi32>
    %c20_i32 = arith.constant 20 : i32
    %23 = vector.broadcast %c20_i32 : i32 to vector<8x1xi32>
    %24 = arith.cmpi slt, %22, %23 : vector<8x1xi32>
    %cst_6 = arith.constant 0.000000e+00 : f32
    %25 = vector.broadcast %cst_6 : f32 to vector<8x1xf32>
    %26 = arith.select %24, %18, %25 : vector<8x1xi1>, vector<8x1xf32>
    %c0_7 = arith.constant 0 : index
    %c0_8 = arith.constant 0 : index
    %27 = vector.load %arg3[%c0_7, %c0_8] : memref<8x1xf32, #tpu.memory_space<vmem>>, vector<8x1xf32>
    tpu.vector_store %arg3[%c0_7, %c0_8], %26 {strides = array<i32>} : memref<8x1xf32, #tpu.memory_space<vmem>>, vector<8x1xf32>,
    return
  }
  func.func @transform_0(%arg0: i32) -> (i32, i32) {
    %c0_i32 = arith.constant 0 : i32
    %c0_i32_0 = arith.constant 0 : i32
    return %arg0, %c0_i32 : i32, i32
  }
  func.func @transform_1(%arg0: i32) -> (i32, i32) {
    %c0_i32 = arith.constant 0 : i32
    %c0_i32_0 = arith.constant 0 : i32
    return %arg0, %c0_i32 : i32, i32
  }
  func.func @transform_2(%arg0: i32) -> (i32, i32) {
    %c0_i32 = arith.constant 0 : i32
    %c0_i32_0 = arith.constant 0 : i32
    return %arg0, %c0_i32 : i32, i32
  }
}

</mosaic_0001>

<bundles_post_ra>
// kernel: tpu_custom_call.1
= control target key start
LH: loop header
LB: loop body
LE: loop exit
PB: predicated region body
PF: predicated region fallthrough
CT: control target
= control target key end

     0   :  { %s301_s9 = smov 0   ;;  %s331_s0 = inlined_call_operand.vmem [shape: f32[20,128], index: 0, kind: input, shape index: {}]   ;;  %s332_s1 = inlined_call_operand.vmem [shape: s32[20,1], index: 1, kind: input, shape index: {}]   ;;  %s333_s2 = inlined_call_operand.vmem [shape: f32[24,1], index: 2, kind: output, shape index: {}]  }
   0x1 LB: > { %s307_s10 = sadd.s32 4294967295, %s283_s9   ;;  %p256_p0 = scmp.ge.s32.totalorder %s283_s9, 1  ;;  %s283_s9 = sphi %s301_s9, %s12_s9  }
   0x2   : > { %p120_p1 = scmp.lt.s32.totalorder %s283_s9, 4 }
   0x4   : > { %p121_p2 = pnand %p256_p0, %p120_p1 }
   0x5   : > { %p144_p3 = scmp.lt.s32.totalorder (!%p121_p2), %s307_s10, 2  ;;  %v285_v0 = vmov (!%p121_p2), 0   ;;  %v167_v6 = vlaneseq (!%p121_p2)  ;;  %s260_s19 = sshll.u32 (!%p121_p2), %s307_s10, 3  ;;  %vm185_vm2 = vcmask (!%p121_p2), 7168  }
   0x6   : > { %124 = sbr.rel (%p121_p2) target bundleno = 334 (0x14e), region = 28  ;;  %272 = vset.pattern.permute.xlu0 (!%p121_p2), %v285_v0  ;;  %v181_v13 = vstv (!%p121_p2), %s260_s19 }
   0x7   : > { %v168_v7 = vand.u32 (!%p121_p2), 127, %v167_v6  ;;  %v180_v12 = vshrl.u32 (!%p121_p2), %v167_v6, 7 }
   0x9   : > { %v182_v14 = vadd.s32 (!%p121_p2), %v181_v13, %v180_v12 }
   0xb   : > { %vm183_vm1 = vcmp.lt.s32.totalorder (!%p121_p2), %v182_v14, 20 }
   0xd   : > { %s145_s11 = scalar_select %p144_p3, %s307_s10, 2 }
   0xf   : > { %s313_s12 = sshll.u32 %s145_s11, 3 }
  0x10   : > { %s147_s15 = scalar_lea.vmem %s331_s0, %s313_s12  ;;  %s151_s18 = scalar_lea.vmem %s332_s1, %s313_s12 }
  0x11   : > { %v156_v1 = vld [vmem:[%s147_s15] sm:$0xff]  ;;  %s155_s22 = scalar_lea.vmem %s333_s2, %s313_s12 }
  0x12   : > { %158 = vmax.xlane.f32.xlu0 %v156_v1  ;;  %v157_v2 = vld [vmem:[%s151_s18] sm:$0xff] }
  0x28   : > { %170 = vperm.xlu0 %272, %v157_v2  }
  0x9f   : > { %v159_v3 = vpop.xlane.xlu0 %158 }
  0xa0   : > { %v160_v4 = vsub.f32 %v156_v1, %v159_v3 }
  0xa2   : > { %v161_v5 = vmul.f32 1.442695, %v160_v4 }
  0xa4   : > { %273 = vpow2.f32 %v161_v5 }
  0xa7   : > { %v171_v8 = vpop.permute.xlu0 %170 }
  0xa8   : > { %vm172_vm0 = vcmp.eq.s32.totalorder %v168_v7, %v171_v8 }
  0xa9   : > { %v173_v10 = vsel %vm172_vm0, %v156_v1, 0.0 }
  0xae   : > { %v274_v9 = vpop.eup %273 }
  0xaf   : > { %163 = vadd.xlane.f32.xlu1 %v274_v9 }
  0xb3   : > { %174 = vadd.xlane.f32.xlu1 %v173_v10 }
 0x13c   : > { %v164_v11 = vpop.xlane.xlu1 %163 }
 0x13d   : > { %275 = vlog2.f32 %v164_v11 }
 0x140   : > { %v175_v15 = vpop.xlane.xlu1 %174 }
 0x141   : > { %v176_v18 = vsub.f32 %v175_v15, %v159_v3 }
 0x147   : > { %v276_v16 = vpop.eup %275 }
 0x148   : > { %v166_v17 = vmul.f32 0.6931472, %v276_v16 }
 0x14a   : > { %v177_v19 = vsub.f32 %v176_v18, %v166_v17 }
 0x14c   : > { %v184_v20 = vsel %vm183_vm1, %v177_v19, 0.0 }
 0x14d   : > { %186 = vst.msk [vmem:[%s155_s22] sm:$0xff] %vm185_vm2, %v184_v20 }
 0x14e PF: > { %s12_s9 = sadd.s32 1, %s283_s9  }
 0x14f   : > { %p9_p4 = scmp.ge.s32.totalorder %s12_s9, 5  }
 0x151   :  { %11 = sbr.rel (!%p9_p4) target bundleno = 1 (0x1), region = 61 }

</bundles_post_ra>
